<compile_context>
chip_gen: v7x
topology: tpu7x:2x2x1
jax: 0.10.0
libtpu: 0.0.40
codegen_flags: <defaults>
</compile_context>

<pallas_src>
import functools
import math

import jax
import jax.numpy as jnp
from jax import lax
from jax.experimental import pallas as pl
from jax.experimental.pallas import tpu as pltpu

_VMEM_LIMIT = 32 * 1024 * 1024


def _round_up(x, m):
    return ((x + m - 1) // m) * m


# ---------------------------------------------------------------------------
# Prologue: fused Q/K/V 1x1-conv projection, computed once per position.
# ---------------------------------------------------------------------------
def _qkv_proj_kernel(c8p, x_ref, w_ref, b_ref, q_ref, kv_ref):
    """x_ref: (1, C, TN) f32; w_ref: (Rtot, C) bf16; b_ref: (Rtot, 1) f32.

    Writes q_ref: (1, C8p, TN) bf16 and kv_ref: (1, C8p + Cv, TN) bf16 where
    the kv rows are [K ; V ; ones ; zero-pad].
    """
    x = x_ref[0].astype(jnp.bfloat16)                                # (C, TN)
    p = jnp.dot(w_ref[...], x, preferred_element_type=jnp.float32)   # (Rtot, TN)
    p = (p + b_ref[...]).astype(jnp.bfloat16)
    q_ref[0] = p[:c8p]
    kv_ref[0] = p[c8p:]


# ---------------------------------------------------------------------------
# Flash-attention + residual kernel (channels-first: positions on lanes).
# ---------------------------------------------------------------------------
def _flash_attn_kernel(c8p, c_out, n_valid, mask_kv,
                       xq_ref, q_ref, kv_ref, gamma_ref, o_ref,
                       m_sc, acc_sc):
    """One (batch, q-tile, kv-tile) grid step.

    xq_ref : (1, C, TQ) f32     residual x columns for this query tile
    q_ref  : (1, C8p, TQ) bf16  projected queries
    kv_ref : (1, C8p+Cv, TK) bf16  rows [0:C8p)=K, rest = [V ; ones ; 0-pad]
    gamma  : (1, 1) f32 in SMEM
    o_ref  : (1, C, TQ)
    m_sc   : (1, TQ) f32 running max
    acc_sc : (Cv, TQ) f32 accumulator; row `c_out` carries the softmax
             denominator thanks to the all-ones row of V (free on the MXU).
    """
    ki = pl.program_id(2)
    tk = kv_ref.shape[2]

    @pl.when(ki == 0)
    def _init():
        m_sc[...] = jnp.full(m_sc.shape, -jnp.inf, dtype=m_sc.dtype)
        acc_sc[...] = jnp.zeros(acc_sc.shape, dtype=acc_sc.dtype)

    q = q_ref[0]                    # (C8p, TQ) bf16
    kv = kv_ref[0]                  # (C8p + Cv, TK) bf16
    k = kv[:c8p]                    # (C8p, TK)  (sublane-aligned slice)
    v = kv[c8p:]                    # (Cv, TK), row c_out is all-ones

    # s[j, i] = <k_j, q_i> = energy[i, j]; contraction over the tiny C8p axis.
    s = lax.dot_general(k, q, dimension_numbers=(((0,), (0,)), ((), ())),
                        preferred_element_type=jnp.float32)      # (TK, TQ)

    if mask_kv:  # static: only emitted when N was padded up to a tile multiple
        j = ki * tk + lax.broadcasted_iota(jnp.int32, s.shape, 0)
        s = jnp.where(j < n_valid, s, -jnp.inf)

    # Online softmax; per-query stats live on lanes -> broadcasts are free.
    m_prev = m_sc[...]                                            # (1, TQ)
    m_new = jnp.maximum(m_prev, jnp.max(s, axis=0, keepdims=True))
    alpha = jnp.exp(m_prev - m_new)                               # (1, TQ)
    # exp in bf16 (inputs <= 0 after max subtraction); p feeds the MXU as bf16
    # anyway and the denominator row is accumulated in f32 by the matmul below.
    p = jnp.exp((s - m_new).astype(jnp.bfloat16))                 # (TK, TQ) bf16
    acc_sc[...] = alpha * acc_sc[...] + jnp.dot(
        v, p, preferred_element_type=jnp.float32)                 # (Cv, TQ)
    m_sc[...] = m_new

    @pl.when(ki == pl.num_programs(2) - 1)
    def _finalize():
        acc = acc_sc[...]
        inv_l = pl.reciprocal(acc[c_out:c_out + 1, :], approx=False)  # (1, TQ)
        out = acc[:c_out, :] * inv_l                                  # (C, TQ)
        # Residual in f32 so gamma == 0 is an exact identity; lane-dense store.
        o_ref[0] = (gamma_ref[0, 0] * out + xq_ref[0]).astype(o_ref.dtype)


# ---------------------------------------------------------------------------
# Wrapper
# ---------------------------------------------------------------------------
def self_attn_forward(x_nchw, wq, bq, wk, bk, wv, bv, gamma, *, tq=256, tk=256):
    """SAGAN Self_Attn forward: gamma * attention(x) + x.

    x_nchw: (B, C, W, H) f32.  wq/wk: (C//8, C), wv: (C, C) are the 1x1 conv
    weights flattened to (C_out, C_in); bq/bk: (C//8,), bv: (C,); gamma scalar.
    """
    B, C, W, H = x_nchw.shape
    n = W * H
    c8 = wq.shape[0]
    assert c8 >= 1, "in_dim must be >= 8"

    # --- tile / padding selection (pad N instead of the old TQ=N fallback) ---
    n_cap = _round_up(n, 128)
    tq = max(128, min(_round_up(int(tq), 128), n_cap))
    tk = max(128, min(_round_up(int(tk), 128), n_cap))
    npad = _round_up(n, math.lcm(tq, tk))
    # v7x has 2 TensorCores: keep >= 2 blocks on the 'parallel' (b, qi) axes.
    if B * (npad // tq) < 2 and tq > 128:
        tq = 128
        npad = _round_up(n, math.lcm(tq, tk))
    mask_kv = (npad != n)

    # --- packed projection weights: [Wq|pad][Wk|pad][Wv|ones-row|pad] --------
    c8p = _round_up(c8, 8)        # Q/K rows padded to a sublane multiple
    cv = _round_up(C + 1, 8)      # V rows + ones row (softmax denominator), padded
    rtot = 2 * c8p + cv

    w_packed = jnp.zeros((rtot, C), jnp.float32)
    w_packed = w_packed.at[0:c8, :].set(wq.astype(jnp.float32))
    w_packed = w_packed.at[c8p:c8p + c8, :].set(wk.astype(jnp.float32))
    w_packed = w_packed.at[2 * c8p:2 * c8p + C, :].set(wv.astype(jnp.float32))
    w_packed = w_packed.astype(jnp.bfloat16)

    b_packed = jnp.zeros((rtot,), jnp.float32)
    b_packed = b_packed.at[0:c8].set(bq.astype(jnp.float32))
    b_packed = b_packed.at[c8p:c8p + c8].set(bk.astype(jnp.float32))
    b_packed = b_packed.at[2 * c8p:2 * c8p + C].set(bv.astype(jnp.float32))
    b_packed = b_packed.at[2 * c8p + C].set(1.0)   # the ones row
    b_packed = b_packed.reshape(rtot, 1)

    gamma_arr = jnp.asarray(gamma, jnp.float32).reshape(1, 1)

    # Channels-first sequence layout = native NCHW reshape (no transpose).
    x_seq = x_nchw.reshape(B, C, n).astype(jnp.float32)
    if npad != n:
        x_seq = jnp.pad(x_seq, ((0, 0), (0, 0), (0, npad - n)))

    # --- prologue: projected Q and [K|V|1] in bf16, once per position --------
    tn = tk
    qp, kvp = pl.pallas_call(
        functools.partial(_qkv_proj_kernel, c8p),
        out_shape=(jax.ShapeDtypeStruct((B, c8p, npad), jnp.bfloat16),
                   jax.ShapeDtypeStruct((B, c8p + cv, npad), jnp.bfloat16)),
        grid_spec=pltpu.PrefetchScalarGridSpec(
            num_scalar_prefetch=0,
            grid=(B, npad // tn),
            in_specs=[
                pl.BlockSpec((1, C, tn), lambda b, i: (b, 0, i)),   # x columns
                pl.BlockSpec((rtot, C), lambda b, i: (0, 0)),       # packed W
                pl.BlockSpec((rtot, 1), lambda b, i: (0, 0)),       # packed bias
            ],
            out_specs=[
                pl.BlockSpec((1, c8p, tn), lambda b, i: (b, 0, i)),
                pl.BlockSpec((1, c8p + cv, tn), lambda b, i: (b, 0, i)),
            ],
        ),
        compiler_params=pltpu.CompilerParams(
            dimension_semantics=("parallel", "parallel"),
            vmem_limit_bytes=_VMEM_LIMIT),
    )(x_seq, w_packed, b_packed)

    # --- flash attention + residual, kv axis last / "arbitrary" --------------
    out_full = pl.pallas_call(
        functools.partial(_flash_attn_kernel, c8p, C, n, mask_kv),
        out_shape=jax.ShapeDtypeStruct((B, C, npad), x_nchw.dtype),
        grid_spec=pltpu.PrefetchScalarGridSpec(
            num_scalar_prefetch=0,
            grid=(B, npad // tq, npad // tk),
            in_specs=[
                pl.BlockSpec((1, C, tq), lambda b, qi, ki: (b, 0, qi)),         # x (residual)
                pl.BlockSpec((1, c8p, tq), lambda b, qi, ki: (b, 0, qi)),       # Q
                pl.BlockSpec((1, c8p + cv, tk), lambda b, qi, ki: (b, 0, ki)),  # [K|V|1]
                pl.BlockSpec(memory_space=pltpu.MemorySpace.SMEM),              # gamma
            ],
            out_specs=pl.BlockSpec((1, C, tq), lambda b, qi, ki: (b, 0, qi)),
            scratch_shapes=[
                pltpu.VMEM((1, tq), jnp.float32),    # running max m
                pltpu.VMEM((cv, tq), jnp.float32),   # [out acc ; denominator row]
            ],
        ),
        compiler_params=pltpu.CompilerParams(
            dimension_semantics=("parallel", "parallel", "arbitrary"),
            vmem_limit_bytes=_VMEM_LIMIT),
    )(x_seq, qp, kvp, gamma_arr)

    return out_full[:, :, :n].reshape(B, C, W, H)


# ---------------------------------------------------------------------------
# Pure-JAX reference (mirrors the PyTorch module math exactly).
# ---------------------------------------------------------------------------
def _reference(x_nchw, wq, bq, wk, bk, wv, bv, gamma):
    B, C, W, H = x_nchw.shape
    N = W * H
    xf = x_nchw.reshape(B, C, N)
    q = jnp.einsum('oc,bcn->bon', wq, xf) + bq[None, :, None]
    k = jnp.einsum('oc,bcn->bon', wk, xf) + bk[None, :, None]
    v = jnp.einsum('oc,bcn->bon', wv, xf) + bv[None, :, None]
    energy = jnp.einsum('bci,bcj->bij', q, k)
    attn = jax.nn.softmax(energy, axis=-1)
    out = jnp.einsum('bcj,bij->bci', v, attn)
    return (gamma * out + xf).reshape(B, C, W, H)


def _make_params(key, C):
    c8 = C // 8
    k1, k2, k3, k4, k5, k6 = jax.random.split(key, 6)
    wq = 0.1 * jax.random.normal(k1, (c8, C), jnp.float32)
    bq = 0.1 * jax.random.normal(k2, (c8,), jnp.float32)
    wk = 0.1 * jax.random.normal(k3, (c8, C), jnp.float32)
    bk = 0.1 * jax.random.normal(k4, (c8,), jnp.float32)
    wv = 0.1 * jax.random.normal(k5, (C, C), jnp.float32)
    bv = 0.1 * jax.random.normal(k6, (C,), jnp.float32)
    return wq, bq, wk, bk, wv, bv


if __name__ == "__main__":
    key = jax.random.PRNGKey(0)
    configs = [
        # (B, C, W, H, tq, tk)
        (2, 16, 16, 16, 256, 256),   # N=256: default single-256 tiles, no padding
        (2, 16, 16, 16, 128, 128),   # N=256: multi-tile flash path (2x2 q/kv tiles)
        (1, 8, 9, 11, 256, 128),     # N=99 -> padded to 128, masked kv tail; B=1
    ]
    for (B, C, W, H, tq, tk) in configs:
        key, kx, kp = jax.random.split(key, 3)
        x = jax.random.normal(kx, (B, C, W, H), jnp.float32)
        params = _make_params(kp, C)
        # module __init__ sets gamma = zeros(1); also check a nonzero-gamma path.
        for g in (0.0, 0.5):
            out = self_attn_forward(x, *params, jnp.float32(g), tq=tq, tk=tk)
            out = jax.block_until_ready(out)
            ref = _reference(x, *params, jnp.float32(g))
            # bf16 MXU operands / bf16 softmax weights -> relaxed tolerance
            assert jnp.allclose(out, ref, atol=2e-2, rtol=2e-2), (
                f"mismatch vs reference: cfg={(B, C, W, H, tq, tk)}, gamma={g}")
    print("KERNEL_OK")
</pallas_src>

<mosaic_0001>
module attributes {stable_mosaic.version = 11 : i64} {
  func.func @_qkv_proj_kernel(%arg0: i32, %arg1: i32, %arg2: memref<1x16x256xf32, #tpu.memory_space<vmem>>, %arg3: memref<40x16xbf16, #tpu.memory_space<vmem>>, %arg4: memref<40x1xf32, #tpu.memory_space<vmem>>, %arg5: memref<1x8x256xbf16, #tpu.memory_space<vmem>>, %arg6: memref<1x32x256xbf16, #tpu.memory_space<vmem>>) attributes {dimension_semantics = [#tpu.dimension_semantics<parallel>, #tpu.dimension_semantics<parallel>], iteration_bounds = array<i64: 2, 1>, scalar_prefetch = 0 : i64, scratch_operands = 0 : i64, tpu.core_type = #tpu.core_type<tc>, window_params = [{transform_indices = @transform_0, window_bounds = array<i64: 1, 16, 256>}, {pipeline_mode = #tpu.pipeline_mode<synchronous>, transform_indices = @transform_1, window_bounds = array<i64: 40, 16>}, {pipeline_mode = #tpu.pipeline_mode<synchronous>, transform_indices = @transform_2, window_bounds = array<i64: 40, 1>}, {transform_indices = @transform_3, window_bounds = array<i64: 1, 8, 256>}, {transform_indices = @transform_4, window_bounds = array<i64: 1, 32, 256>}]} {
    %c0 = arith.constant 0 : index
    %c0_0 = arith.constant 0 : index
    %c0_1 = arith.constant 0 : index
    %0 = vector.load %arg2[%c0, %c0_0, %c0_1] : memref<1x16x256xf32, #tpu.memory_space<vmem>>, vector<1x16x256xf32>
    %1 = vector.shape_cast %0 : vector<1x16x256xf32> to vector<16x256xf32>
    %2 = arith.truncf %1 : vector<16x256xf32> to vector<16x256xbf16>
    %c0_2 = arith.constant 0 : index
    %c0_3 = arith.constant 0 : index
    %3 = vector.load %arg3[%c0_2, %c0_3] : memref<40x16xbf16, #tpu.memory_space<vmem>>, vector<40x16xbf16>
    %cst = arith.constant dense<0.000000e+00> : vector<40x256xf32>
    %4 = tpu.matmul %3, %2, %cst {dimension_numbers = #tpu.dot_dimension_numbers<[1], [0], [0], [1], [0, 0, 1, 1], [], []>} : vector<40x16xbf16>, vector<16x256xbf16>, vector<40x256xf32> -> vector<40x256xf32>
    %c0_4 = arith.constant 0 : index
    %c0_5 = arith.constant 0 : index
    %5 = vector.load %arg4[%c0_4, %c0_5] : memref<40x1xf32, #tpu.memory_space<vmem>>, vector<40x1xf32>
    %6 = vector.broadcast %5 : vector<40x1xf32> to vector<40x256xf32>
    %7 = arith.addf %4, %6 : vector<40x256xf32>
    %8 = arith.truncf %7 : vector<40x256xf32> to vector<40x256xbf16>
    %9 = vector.extract_strided_slice %8 {offsets = [0, 0], sizes = [8, 256], strides = [1, 1]} : vector<40x256xbf16> to vector<8x256xbf16>
    %c0_6 = arith.constant 0 : index
    %c0_7 = arith.constant 0 : index
    %c0_8 = arith.constant 0 : index
    %10 = vector.load %arg5[%c0_6, %c0_7, %c0_8] : memref<1x8x256xbf16, #tpu.memory_space<vmem>>, vector<1x8x256xbf16>
    %11 = vector.shape_cast %10 : vector<1x8x256xbf16> to vector<8x256xbf16>
    %12 = vector.shape_cast %9 : vector<8x256xbf16> to vector<1x8x256xbf16>
    tpu.vector_store %arg5[%c0_6, %c0_7, %c0_8], %12 {strides = array<i32>} : memref<1x8x256xbf16, #tpu.memory_space<vmem>>, vector<1x8x256xbf16>,
    %13 = vector.extract_strided_slice %8 {offsets = [8, 0], sizes = [32, 256], strides = [1, 1]} : vector<40x256xbf16> to vector<32x256xbf16>
    %c0_9 = arith.constant 0 : index
    %c0_10 = arith.constant 0 : index
    %c0_11 = arith.constant 0 : index
    %14 = vector.load %arg6[%c0_9, %c0_10, %c0_11] : memref<1x32x256xbf16, #tpu.memory_space<vmem>>, vector<1x32x256xbf16>
    %15 = vector.shape_cast %14 : vector<1x32x256xbf16> to vector<32x256xbf16>
    %16 = vector.shape_cast %13 : vector<32x256xbf16> to vector<1x32x256xbf16>
    tpu.vector_store %arg6[%c0_9, %c0_10, %c0_11], %16 {strides = array<i32>} : memref<1x32x256xbf16, #tpu.memory_space<vmem>>, vector<1x32x256xbf16>,
    return
  }
  func.func @transform_0(%arg0: i32, %arg1: i32) -> (i32, i32, i32) {
    %c0_i32 = arith.constant 0 : i32
    %c0_i32_0 = arith.constant 0 : i32
    return %arg0, %c0_i32, %arg1 : i32, i32, i32
  }
  func.func @transform_1(%arg0: i32, %arg1: i32) -> (i32, i32) {
    %c0_i32 = arith.constant 0 : i32
    %c0_i32_0 = arith.constant 0 : i32
    %c0_i32_1 = arith.constant 0 : i32
    return %c0_i32, %c0_i32_0 : i32, i32
  }
  func.func @transform_2(%arg0: i32, %arg1: i32) -> (i32, i32) {
    %c0_i32 = arith.constant 0 : i32
    %c0_i32_0 = arith.constant 0 : i32
    %c0_i32_1 = arith.constant 0 : i32
    return %c0_i32, %c0_i32_0 : i32, i32
  }
  func.func @transform_3(%arg0: i32, %arg1: i32) -> (i32, i32, i32) {
    %c0_i32 = arith.constant 0 : i32
    %c0_i32_0 = arith.constant 0 : i32
    return %arg0, %c0_i32, %arg1 : i32, i32, i32
  }
  func.func @transform_4(%arg0: i32, %arg1: i32) -> (i32, i32, i32) {
    %c0_i32 = arith.constant 0 : i32
    %c0_i32_0 = arith.constant 0 : i32
    return %arg0, %c0_i32, %arg1 : i32, i32, i32
  }
}

</mosaic_0001>

<bundles_post_ra>
// kernel: tpu_custom_call.1
= control target key start
LH: loop header
LB: loop body
LE: loop exit
PB: predicated region body
PF: predicated region fallthrough
CT: control target
= control target key end

     0   :  { %10 = vsyncpa [#allocation3], 0  ;;  %s983_s0 = inlined_call_operand.vmem [shape: f32[2,16,256], index: 0, kind: input, shape index: {}]   ;;  %s984_s1 = inlined_call_operand.vmem [shape: bf16[40,16], index: 1, kind: input, shape index: {}]   ;;  %s985_s2 = inlined_call_operand.vmem [shape: f32[40,1], index: 2, kind: input, shape index: {}]   ;;  %s986_s3 = inlined_call_operand.hbm [shape: bf16[2,8,256], index: 3, kind: output, shape index: {0}]   ;;  %s987_s4 = inlined_call_operand.hbm [shape: bf16[2,32,256], index: 4, kind: output, shape index: {1}]  }
   0x1   :  { %12 = vsyncpa [#allocation3 + $0x1], 0 }
   0x2   :  { %13 = vsyncpa [#allocation5], 0 }
   0x3   :  { %15 = vsyncpa [#allocation5 + $0x1], 0  ;;  %s803_s15 = smov 0   ;;  %s805_s16 = smov 0  }
   0x4   :  { %s807_s17 = smov 0   ;;  %s809_s18 = smov 0  }
   0x5   :  { %s811_s19 = smov 0   ;;  %s813_s20 = smov 0  }
   0x6 LB: > { %s555_s21 = sadd.s32 4294967295, %s771_s20   ;;  %s556_s22 = sadd.s32 4294967294, %s771_s20   ;;  %s771_s20 = sphi %s813_s20, %s21_s20   ;;  %s767_s19 = sphi %s811_s19, %s994_s19   ;;  %s763_s18 = sphi %s809_s18, %s993_s18   ;;  %s759_s17 = sphi %s807_s17, %s992_s17   ;;  %s755_s16 = sphi %s805_s16, %s991_s16   ;;  %s751_s15 = sphi %s803_s15, %s990_s15  }
   0x7   : > { %s33_s23 = sadd.s32 1, %s767_s19  ;;  %s112_s24 = sadd.s32 1, %s759_s17 }
   0x8   : > { %p35_p0 = scmp.ge.s32.totalorder %s33_s23, 2  ;;  %p122_p1 = scmp.ne.s32.totalorder %s759_s17, %s755_s16 }
   0x9   : > { %p123_p2 = scmp.eq.s32.totalorder %s555_s21, 1  ;;  %p128_p3 = scmp.ne.s32.totalorder %s755_s16, %s751_s15 }
   0xa   : > { %s996_s23 = smov (%p35_p0, %s33_s23), 0  ;;  %p129_p5 = scmp.eq.s32.totalorder %s556_s22, 1 }
   0xb   : > { %p843_p4 = por %p123_p2, %p122_p1  ;;  %s107_s26 = ssub.s32 %s767_s19, %s996_s23 }
   0xc   : > { %p559_p6 = scmp.ge.s32.totalorder %s771_s20, 1  ;;  %p110_p7 = scmp.eq.s32.totalorder %s107_s26, 0 }
   0xd   : > { %p850_p8 = por %p129_p5, %p128_p3  ;;  %p194_p9 = scmp.lt.s32.totalorder %s771_s20, 3 }
   0xe   : > { %s856_s28 = scalar_select %p110_p7, %s759_s17, %s112_s24  }
   0xf   : > { %p195_p10 = pnand %p559_p6, %p194_p9 }
  0x10   : > { %p230_p11 = scmp.lt.s32.totalorder (!%p195_p10), %s763_s18, 1  ;;  %v773_v0 = vmov (!%p195_p10), 0   ;;  %v253_v1 = vld [vmem:[%s985_s2] sm:$0xff] (!%p195_p10)  ;;  %v255_v2 = vld [vmem:[%s985_s2 + $0x10] sm:$0xff] (!%p195_p10)  ;;  %v254_v3 = vld [vmem:[%s985_s2 + $0x8] sm:$0xff] (!%p195_p10)  ;;  %vm296_vm0 = vcmask (!%p195_p10), 130048  }
  0x11   : > { %198 = sbr.rel (%p195_p10) target bundleno = 291 (0x123), region = 32  ;;  %338 = vmatprep.mubr.bf16.mxu0 (!%p195_p10), %v773_v0  ;;  %348 = vmatprep.mubr.bf16.mxu1 (!%p195_p10), %v773_v0  ;;  %v256_v4 = vld [vmem:[%s985_s2 + $0x18] sm:$0xff] (!%p195_p10)  ;;  %v658_v11 = vld [vmem:[%s984_s1] sm:$0xff] (!%p195_p10)   ;;  %v659_v12 = vld [vmem:[%s984_s1 + $0x8] sm:$0xff] (!%p195_p10)   ;;  %s774_s30 = smov (!%p195_p10), [#allocation2]  }
  0x12   : > { %656 = vset.pattern.permute.xlu0 (!%p195_p10), %v773_v0  ;;  %657 = vset.pattern.permute.xlu1 (!%p195_p10), %v773_v0  ;;  %v257_v13 = vld [vmem:[%s985_s2 + $0x20] sm:$0xff] (!%p195_p10)  ;;  %v660_v14 = vld [vmem:[%s984_s1 + $0x10] ss:$0 sps:$4 sm:$0xff] (!%p195_p10)   ;;  %s665_s5 = sshll.u32 (!%p195_p10), %s774_s30, 4  ;;  %s666_s5 = int_to_ptr.vmem [resolvable:$false] %s665_s5 }
  0x13   : > { %260 = vperm.xlu0 (!%p195_p10), %656, %v253_v1   ;;  %270 = vperm.xlu1 (!%p195_p10), %657, %v255_v2   ;;  %s667_s6 = scalar_lea.vmem (!%p195_p10), %s666_s5, 256 }
  0x17   : > { %265 = vperm.xlu0 (!%p195_p10), %656, %v254_v3   ;;  %275 = vperm.xlu1 (!%p195_p10), %657, %v256_v4  }
  0x18   : > { %s231_s29 = scalar_select %p230_p11, %s763_s18, 1 }
  0x1a   : > { %s583_s8 = sshll.u32 %s231_s29, 5 }
  0x1b   : > { %s237_s11 = scalar_lea.vmem %s983_s0, %s583_s8  ;;  %280 = vperm.xlu0 %656, %v257_v13   ;;  %s888_s8 = sand.u32 1, %s755_s16  }
  0x1c   : > { %v243_v5 = vld [vmem:[%s237_s11 + $0x8] sm:$0xff]  ;;  %v245_v6 = vld [vmem:[%s237_s11 + $0x18] sm:$0xff]  ;;  %v242_v7 = vld [vmem:[%s237_s11] sm:$0xff]  ;;  %s560_s9 = sshll.u32 %s888_s8, 3  ;;  %s561_s10 = sshll.u32 %s888_s8, 5 }
  0x1d   : > { %v247_v8 = vpack.c.bf16 %v245_v6, %v243_v5  ;;  %v244_v9 = vld [vmem:[%s237_s11 + $0x10] sm:$0xff]  ;;  %s589_s11 = sshll.u32 %s763_s18, 7  ;;  %s221_s12 = scalar_lea.vmem [#allocation2], %s560_s9 }
  0x1e   : > { %v246_v10 = vpack.c.bf16 %v244_v9, %v242_v7  ;;  %s426_s13 = sshll.u32 %s221_s12, 4  ;;  %s896_s22 = scalar_lea.hbm %s986_s3, %s589_s11  ;;  %s898_s13 = int_to_ptr.vmem [resolvable:$true] %s426_s13 }
  0x1f   : > { %306 = vmatprep.subr.bf16.mxu0 %v247_v8  ;;  %591 = vmatprep.subr.bf16.mxu1 %v247_v8  ;;  %s900_s24 = scalar_lea.vmem [#allocation4], %s561_s10  ;;  %s405_s26 = scalar_lea.sflag [#allocation3], %s888_s8 }
  0x20   : > { %307 = vmatpush1.bf16.msra.mxu0 %v246_v10  ;;  %592 = vmatpush1.bf16.msra.mxu1 %v246_v10  ;;  %s661_s29 = scalar_lea.vmem %s898_s13, 128  ;;  %p668_p1 = scmp.lt.s32.totalorder %s898_s13, %s666_s5 }
  0x21   : > { %p662_p12 = scmp.ne.s32.totalorder %s898_s13, %s661_s29  ;;  %p669_p2 = scmp.lt.s32.totalorder %s667_s6, %s661_s29 }
  0x23   : > { %567 = vmatmul.mubr.msk.bf16.vlgmr.msra.gmra.mrb[0].mxu0 %vm296_vm0, %v658_v11  ;;  %568 = vmatmul.mubr.msk.bf16.vlgmr.msra.gmra.mrb[0].mxu1 %vm296_vm0, %v659_v12  ;;  %p663_p13 = pnand %p662_p12, %p843_p4  ;;  %p670_p3 = por %p669_p2, %p668_p1 }
  0x24   : > { %358 = vmatprep.mubr.bf16.mxu1 %v773_v0 }
  0x25   : > { %p664_p0 = pneg %p663_p13 }
  0x27   : > { %p671_p5 = pnand %p670_p3, %p664_p0 }
  0x2b   : > { %569 = vmatmul.mubr.msk.bf16.gmra.mrb[4].mxu1 %vm296_vm0, %v660_v14 }
  0x92   : > { %v261_v15 = vpop.permute.xlu0 %260  ;;  %v271_v16 = vpop.permute.xlu1 %270 }
  0x96   : > { %v266_v17 = vpop.permute.xlu0 %265  ;;  %v276_v18 = vpop.permute.xlu1 %275 }
  0xf6   : > { %v340_v19 = vpop.f32.mrb[0].mxu0  ;;  %v350_v20 = vpop.f32.mrb[0].mxu1 }
  0xf7   : > { %v341_v21 = vadd.f32 %v340_v19, %v261_v15  ;;  %v351_v22 = vadd.f32 %v350_v20, %v271_v16  ;;  %v342_v23 = vpop.f32.mrb[1].mxu0  ;;  %v352_v24 = vpop.f32.mrb[1].mxu1 }
  0xf8   : > { %v343_v25 = vadd.f32 %v342_v23, %v261_v15  ;;  %v353_v26 = vadd.f32 %v352_v24, %v271_v16  ;;  %v344_v27 = vpop.f32.mrb[2].mxu0  ;;  %v354_v28 = vpop.f32.mrb[2].mxu1 }
  0xf9   : > { %v345_v29 = vadd.f32 %v344_v27, %v266_v17  ;;  %v355_v30 = vadd.f32 %v354_v28, %v276_v18  ;;  %v346_v31 = vpop.f32.mrb[3].mxu0  ;;  %v356_v32 = vpop.f32.mrb[3].mxu1 }
  0xfa   : > { %v584_v33 = vpack.c.bf16 %v343_v25, %v341_v21  ;;  %v586_v34 = vpack.c.bf16 %v353_v26, %v351_v22  ;;  %v347_v35 = vadd.f32 %v346_v31, %v266_v17  ;;  %v357_v36 = vadd.f32 %v356_v32, %v276_v18 }
  0xfc   : > { %401 = vst [vmem:[%s900_s24 + $0x8] sm:$0xff] %v586_v34  ;;  %v585_v37 = vpack.c.bf16 %v347_v35, %v345_v29  ;;  %v587_v38 = vpack.c.bf16 %v357_v36, %v355_v30  ;;  %379 = vst [vmem:[%s221_s12] sm:$0xff] %v584_v33 }
  0xfd   : > { %674 = shalt.err (!%p671_p5)
}
  0xfe   : > { %s675_s7 = scalar_lea.hbm %s896_s22, 128  ;;  %s679_s11 = scalar_lea.hbm %s986_s3, 256 }
  0xff   : > { %p676_p6 = scmp.ne.s32.totalorder %s896_s22, %s675_s7  ;;  %p680_p10 = scmp.lt.u32.totalorder %s896_s22, %s986_s3 }
 0x100   : > { %p681_p11 = scmp.lt.u32.totalorder %s679_s11, %s675_s7  ;;  %p683_p13 = scmp.lt.u32.totalorder %s675_s7, %s896_s22 }
 0x101   : > { %p677_p7 = pnand %p676_p6, %p843_p4 }
 0x102   : > { %p682_p12 = por %p681_p11, %p680_p10 }
 0x103   : > { %p678_p9 = pneg %p677_p7 }
 0x104   : > { %p684_p0 = por %p683_p13, %p682_p12 }
 0x106   : > { %p685_p1 = pnand %p684_p0, %p678_p9 }
 0x108   : > { %688 = shalt.err (!%p685_p1)
}
 0x109   : > { %593 = dma.vmem_to_hbm [thread:$0]  (%p843_p4), %s898_s13, 128, %s896_s22, %s405_s26   ;;  %v281_v39 = vpop.permute.xlu0 %280  ;;  %400 = vst [vmem:[%s900_s24] sm:$0xff] %v585_v37  ;;  %402 = vst [vmem:[%s900_s24 + $0x10] sm:$0xff] %v587_v38  ;;  %v360_v40 = vpop.f32.mrb[4].mxu1 }
 0x10a   : > { %s441_s21 = sshll.u32 %s900_s24, 4  ;;  %s590_s29 = sshll.u32 %s763_s18, 9  ;;  %v361_v41 = vadd.f32 %v360_v40, %v281_v39  ;;  %v362_v42 = vpop.f32.mrb[5].mxu1  ;;  %s929_s21 = int_to_ptr.vmem [resolvable:$true] %s441_s21 }
 0x10b   : > { %v363_v43 = vadd.f32 %v362_v42, %v281_v39  ;;  %v364_v44 = vpop.f32.mrb[6].mxu1  ;;  %s934_s22 = scalar_lea.hbm %s987_s4, %s590_s29  ;;  %s410_s26 = scalar_lea.sflag [#allocation5], %s888_s8 }
 0x10c   : > { %v365_v45 = vpop.f32.mrb[7].mxu1  ;;  %s689_s5 = scalar_lea.vmem %s929_s21, 512  ;;  %s775_s18 = smov [#allocation4]  }
 0x10d   : > { %v588_v46 = vpack.c.bf16 %v363_v43, %v361_v41  ;;  %p690_p2 = scmp.ne.s32.totalorder %s929_s21, %s689_s5  ;;  %s693_s6 = sshll.u32 %s775_s18, 4  ;;  %s694_s6 = int_to_ptr.vmem [resolvable:$false] %s693_s6 }
 0x10e   : > { %s695_s7 = scalar_lea.vmem %s694_s6, 1024  ;;  %p696_p6 = scmp.lt.s32.totalorder %s929_s21, %s694_s6 }
 0x10f   : > { %403 = vst [vmem:[%s900_s24 + $0x18] sm:$0xff] %v588_v46  ;;  %p691_p3 = pnand %p690_p2, %p843_p4  ;;  %p697_p7 = scmp.lt.s32.totalorder %s695_s7, %s689_s5 }
 0x111   : > { %p692_p5 = pneg %p691_p3  ;;  %p698_p9 = por %p697_p7, %p696_p6 }
 0x113   : > { %p699_p10 = pnand %p698_p9, %p692_p5 }
 0x115   : > { %702 = shalt.err (!%p699_p10)
}
 0x116   : > { %s703_s24 = scalar_lea.hbm %s934_s22, 512  ;;  %s707_s11 = scalar_lea.hbm %s987_s4, 1024 }
 0x117   : > { %p704_p11 = scmp.ne.s32.totalorder %s934_s22, %s703_s24  ;;  %p708_p0 = scmp.lt.u32.totalorder %s934_s22, %s987_s4 }
 0x118   : > { %p709_p1 = scmp.lt.u32.totalorder %s707_s11, %s703_s24  ;;  %p711_p3 = scmp.lt.u32.totalorder %s703_s24, %s934_s22 }
 0x119   : > { %p705_p12 = pnand %p704_p11, %p843_p4 }
 0x11a   : > { %p710_p2 = por %p709_p1, %p708_p0 }
 0x11b   : > { %p706_p13 = pneg %p705_p12 }
 0x11c   : > { %p712_p5 = por %p711_p3, %p710_p2 }
 0x11e   : > { %p713_p6 = pnand %p712_p5, %p706_p13 }
 0x120   : > { %716 = shalt.err (!%p713_p6)
}
 0x121   : > { %s776_s29 = smov 128   ;;  %s777_s30 = smov 8  }
 0x122   : > { %594 = dma.vmem_to_hbm [thread:$0]  (%p843_p4), %s929_s21, 512, %s934_s22, %s410_s26, %s776_s29, %s776_s29, %s777_s30  }
 0x123 PF: > { %p604_p7 = scmp.ge.s32.totalorder %s771_s20, 2  ;;  %s456_s13 = sand.u32 1, %s751_s15  }
 0x124   : > { %s457_s5 = scalar_lea.sflag [#allocation3], %s456_s13 }
 0x125   : > { %p598_p9 = pnand %p604_p7, %p850_p8 }
 0x127   : > { %742 = dma.done.wait (!%p598_p9), %s457_s5, 128  }
 0x128   : > { %744 = vsyncadd (!%p598_p9), %s457_s5, 4294967168  ;;  %s466_s18 = scalar_lea.sflag [#allocation5], %s456_s13 }
 0x129   : > { %746 = dma.done.wait (!%p598_p9), %s466_s18, 512  }
 0x12a   : > { %748 = vsyncadd (!%p598_p9), %s466_s18, 4294966784  ;;  %s21_s20 = sadd.s32 1, %s771_s20   ;;  %s990_s15 = smov %s755_s16 }
 0x12b   : > { %p18_p10 = scmp.ge.s32.totalorder %s21_s20, 4   ;;  %s991_s16 = smov %s759_s17 }
 0x12c   : > { %s992_s17 = smov %s856_s28  ;;  %s993_s18 = smov %s767_s19 }
 0x12d   : > { %s994_s19 = smov %s996_s23  ;;  %20 = sbr.rel (!%p18_p10) target bundleno = 6 (0x6), region = 84 }
 0x134   :  { %471 = vsyncpa [#allocation3], 1 }
 0x135   :  { %473 = vsyncpa [#allocation3 + $0x1], 1 }
 0x136   :  { %474 = vsyncpa [#allocation5], 1 }
 0x137   :  { %476 = vsyncpa [#allocation5 + $0x1], 1 }

</bundles_post_ra>
